<compile_context>
chip_gen: v6e
topology: v6e:2x2x1
jax: 0.10.0
libtpu: 0.0.40
codegen_flags: <defaults>
</compile_context>

<pallas_src>
import functools

import jax
import jax.numpy as jnp
import numpy as np
from jax.experimental import pallas as pl
from jax.experimental.pallas import tpu as pltpu

LAMBDA_WEIGHT = 0.4      # HYBRID_LOSS
HUBER_DELTA = 1.0        # torch.nn.HuberLoss default delta
COS_EPS = 1e-8           # torch.nn.CosineSimilarity default eps
NEG_FILL = -1.0e9        # masked_fill value


def _hybrid_loss_kernel(s_x_ref, t_x_ref, s_mask_ref, t_mask_ref,
                        s_w_ref, t_w_ref, s_b_ref, t_b_ref,
                        out_ref,
                        m_s_ref, l_s_ref, acc_s_ref,
                        m_t_ref, l_t_ref, acc_t_ref):
    b = pl.program_id(0)                  # batch row
    j = pl.program_id(1)                  # sequence tile

    @pl.when(j == 0)
    def _init():
        neg_inf = jnp.full((1, 1), -jnp.inf, jnp.float32)
        m_s_ref[...] = neg_inf
        m_t_ref[...] = neg_inf
        l_s_ref[...] = jnp.zeros((1, 1), jnp.float32)
        l_t_ref[...] = jnp.zeros((1, 1), jnp.float32)
        acc_s_ref[...] = jnp.zeros(acc_s_ref.shape, jnp.float32)
        acc_t_ref[...] = jnp.zeros(acc_t_ref.shape, jnp.float32)

    def _update(x_ref, mask_ref, w_ref, b_ref, m_ref, l_ref, acc_ref):
        # bf16 activations straight onto the MXU (matches torch .to(bfloat16));
        # no-op if the input is already bf16.
        x = x_ref[...].astype(jnp.bfloat16)                     # (tS, H)
        w = w_ref[...]                                          # (1, H) bf16
        # Pooler logits for this tile: contract over H on the MXU, f32 acc.
        logits = jax.lax.dot_general(
            w, x,
            dimension_numbers=(((1,), (1,)), ((), ())),
            preferred_element_type=jnp.float32) + b_ref[0, 0]   # (1, tS)
        mask = mask_ref[pl.ds(b, 1), :]                         # (1, tS)
        logits = jnp.where(mask > 0, logits, NEG_FILL)          # masked_fill
        # Online-softmax update.
        m_prev = m_ref[...]                                     # (1, 1)
        m_new = jnp.maximum(m_prev, jnp.max(logits, axis=-1, keepdims=True))
        alpha = jnp.exp(m_prev - m_new)                         # (1, 1)
        p = jnp.exp(logits - m_new)                             # (1, tS)
        l_ref[...] = alpha * l_ref[...] + jnp.sum(p, axis=-1, keepdims=True)
        # Attention-pooled partial sum on the MXU: (1,tS) x (tS,H) -> (1,H).
        acc_ref[...] = alpha * acc_ref[...] + jnp.dot(
            p.astype(jnp.bfloat16), x, preferred_element_type=jnp.float32)
        m_ref[...] = m_new

    _update(s_x_ref, s_mask_ref, s_w_ref, s_b_ref, m_s_ref, l_s_ref, acc_s_ref)
    _update(t_x_ref, t_mask_ref, t_w_ref, t_b_ref, m_t_ref, l_t_ref, acc_t_ref)

    @pl.when(j == pl.num_programs(1) - 1)
    def _finalize():
        s_pooled = acc_s_ref[...] / l_s_ref[...]                # (1, H) f32
        t_pooled = acc_t_ref[...] / l_t_ref[...]
        # Huber (delta = 1.0), summed over H for this batch row.
        d = s_pooled - t_pooled
        ad = jnp.abs(d)
        h = jnp.where(ad < HUBER_DELTA,
                      0.5 * d * d,
                      HUBER_DELTA * (ad - 0.5 * HUBER_DELTA))
        huber_sum = jnp.sum(h, axis=-1, keepdims=True)          # (1, 1)
        # Cosine similarity along H.
        dot = jnp.sum(s_pooled * t_pooled, axis=-1, keepdims=True)
        sn = jnp.sqrt(jnp.sum(s_pooled * s_pooled, axis=-1, keepdims=True))
        tn = jnp.sqrt(jnp.sum(t_pooled * t_pooled, axis=-1, keepdims=True))
        cos = dot / jnp.maximum(sn * tn, COS_EPS)
        one_m_cos = 1.0 - cos                                   # (1, 1)
        # Write the two per-row scalars into an (8,128) output slab:
        # [0,0] = huber_sum, [0,1] = 1 - cos.
        sub = jax.lax.broadcasted_iota(jnp.int32, out_ref.shape, 0)
        lane = jax.lax.broadcasted_iota(jnp.int32, out_ref.shape, 1)
        out_ref[...] = jnp.where(
            (sub == 0) & (lane == 0), huber_sum,
            jnp.where((sub == 0) & (lane == 1), one_m_cos, 0.0))


def _modify_mask_to_attend_padding(mask, num_extra_padding=1):
    """Vectorized modify_mask_to_attend_padding (left-packed masks)."""
    S = mask.shape[1]
    seq_len = jnp.sum(mask, axis=-1, keepdims=True)
    pos = jnp.arange(S, dtype=mask.dtype)[None, :]
    extra = (pos >= seq_len) & (pos < seq_len + num_extra_padding)
    return jnp.where(extra, jnp.ones_like(mask), mask)


def _pick_tile_s(S, H, itemsize, stream_budget_bytes):
    """Largest S tile whose double-buffered stream fits the VMEM budget."""
    bytes_per_row = 4 * H * itemsize     # 2 streamed tensors x 2 buffers
    cap = max(8, stream_budget_bytes // bytes_per_row)
    if S <= cap:
        return S
    t = int(cap // 128) * 128
    while t >= 128:
        if S % t == 0:
            return t
        t -= 128
    return S   # fallback: no 128-multiple divisor; keep whole sequence


@functools.partial(jax.jit, static_argnames=("lambda_weight",))
def sequence_level_hybrid_loss(student_output, teacher_output,
                               student_mask, teacher_mask,
                               s_w, s_b, t_w, t_b,
                               lambda_weight=LAMBDA_WEIGHT):
    """Returns (hybrid_loss, cos_loss, huber_loss, current_lambda), matching
    the PyTorch module with dynamic_ratio=False (ADAPTIVE_LOSS_RATIO=False)."""
    B, S, H = student_output.shape
    assert teacher_output.shape == (B, S, H)

    # Tiny O(B*S) preprocessing kept outside the kernel: the attend-padding fix
    # needs global-S visibility and costs ~1/H of the kernel's HBM traffic.
    s_mask = student_mask.astype(jnp.float32)
    t_mask = _modify_mask_to_attend_padding(teacher_mask.astype(jnp.float32), 1)

    s_w2 = s_w.reshape(1, H).astype(jnp.bfloat16)
    t_w2 = t_w.reshape(1, H).astype(jnp.bfloat16)
    s_b2 = jnp.asarray(s_b).astype(jnp.float32).reshape(1, 1)
    t_b2 = jnp.asarray(t_b).astype(jnp.float32).reshape(1, 1)

    # Generation-aware tiling: smaller streamed tiles on v7x (64 MiB VMEM).
    try:
        vmem_cap = int(pltpu.get_tpu_info().vmem_capacity_bytes)
    except Exception:
        vmem_cap = 64 << 20
    itemsize = jnp.dtype(student_output.dtype).itemsize
    tS = _pick_tile_s(S, H, itemsize, stream_budget_bytes=vmem_cap // 4)
    grid = (B, S // tS)

    x_spec = pl.BlockSpec((None, tS, H), lambda b, j: (b, j, 0))
    mask_spec = pl.BlockSpec((B, tS), lambda b, j: (0, j))
    w_spec = pl.BlockSpec((1, H), lambda b, j: (0, 0))
    b_spec = pl.BlockSpec((1, 1), lambda b, j: (0, 0),
                          memory_space=pltpu.MemorySpace.SMEM)

    out = pl.pallas_call(
        _hybrid_loss_kernel,
        out_shape=jax.ShapeDtypeStruct((B, 8, 128), jnp.float32),
        grid_spec=pltpu.PrefetchScalarGridSpec(
            num_scalar_prefetch=0,
            grid=grid,
            in_specs=[x_spec, x_spec, mask_spec, mask_spec,
                      w_spec, w_spec, b_spec, b_spec],
            out_specs=pl.BlockSpec((None, 8, 128), lambda b, j: (b, 0, 0)),
            scratch_shapes=[pltpu.VMEM((1, 1), jnp.float32),   # m_s
                            pltpu.VMEM((1, 1), jnp.float32),   # l_s
                            pltpu.VMEM((1, H), jnp.float32),   # acc_s
                            pltpu.VMEM((1, 1), jnp.float32),   # m_t
                            pltpu.VMEM((1, 1), jnp.float32),   # l_t
                            pltpu.VMEM((1, H), jnp.float32)]), # acc_t
        compiler_params=pltpu.CompilerParams(
            dimension_semantics=("parallel", "arbitrary"),
            vmem_limit_bytes=min((vmem_cap * 3) // 4, 112 << 20)),
    )(student_output, teacher_output, s_mask, t_mask, s_w2, t_w2, s_b2, t_b2)

    # Tiny final reductions over B, kept in f32.
    huber_loss = jnp.sum(out[:, 0, 0]) / (B * H)
    cos_loss = jnp.sum(out[:, 0, 1]) / B
    hybrid = (1.0 - lambda_weight) * huber_loss + lambda_weight * cos_loss
    # TODO(synk): dynamic_ratio lambda adaptation is host-side Python state in
    # the reference module; with ADAPTIVE_LOSS_RATIO=False it never executes.
    return hybrid, cos_loss, huber_loss, lambda_weight


def _reference(s_out, t_out, s_mask, t_mask, s_w, s_b, t_w, t_b, lam):
    """Pure-JAX mirror of the PyTorch forward (bf16 inputs, f32 math)."""
    s_x = s_out.astype(jnp.bfloat16).astype(jnp.float32)
    t_x = t_out.astype(jnp.bfloat16).astype(jnp.float32)
    s_m = s_mask.astype(jnp.float32)
    t_m = _modify_mask_to_attend_padding(t_mask.astype(jnp.float32), 1)
    s_wf = s_w.astype(jnp.bfloat16).astype(jnp.float32).reshape(1, -1)
    t_wf = t_w.astype(jnp.bfloat16).astype(jnp.float32).reshape(1, -1)
    s_logits = jnp.einsum('bsh,oh->bs', s_x, s_wf) + s_b
    t_logits = jnp.einsum('bsh,oh->bs', t_x, t_wf) + t_b
    s_logits = jnp.where(s_m > 0, s_logits, NEG_FILL)
    t_logits = jnp.where(t_m > 0, t_logits, NEG_FILL)
    s_wt = jax.nn.softmax(s_logits, axis=1)
    t_wt = jax.nn.softmax(t_logits, axis=1)
    s_pooled = jnp.einsum('bs,bsh->bh', s_wt, s_x)
    t_pooled = jnp.einsum('bs,bsh->bh', t_wt, t_x)
    d = s_pooled - t_pooled
    ad = jnp.abs(d)
    h = jnp.where(ad < HUBER_DELTA, 0.5 * d * d,
                  HUBER_DELTA * (ad - 0.5 * HUBER_DELTA))
    huber = jnp.mean(h)
    dot = jnp.sum(s_pooled * t_pooled, -1)
    denom = jnp.maximum(jnp.linalg.norm(s_pooled, axis=-1)
                        * jnp.linalg.norm(t_pooled, axis=-1), COS_EPS)
    cos_loss = jnp.mean(1.0 - dot / denom)
    hybrid = (1.0 - lam) * huber + lam * cos_loss
    return hybrid, cos_loss, huber


if __name__ == "__main__":
    key = jax.random.PRNGKey(0)
    B, S, H = 2, 16, 32   # small stand-in for (batch, seq, hidden=4096)
    k1, k2, k3, k4, k5, k6 = jax.random.split(key, 6)

    student_output = jax.random.normal(k1, (B, S, H), jnp.float32)
    teacher_output = jax.random.normal(k2, (B, S, H), jnp.float32)

    # left-packed attention masks (1s then trailing 0 padding)
    s_lens = jnp.array([16, 11])
    t_lens = jnp.array([12, 16])
    pos = jnp.arange(S)[None, :]
    student_mask = (pos < s_lens[:, None]).astype(jnp.float32)
    teacher_mask = (pos < t_lens[:, None]).astype(jnp.float32)

    # pooler params, Linear(H, 1): weight [1, H], bias [1]
    bound = 1.0 / (H ** 0.5)
    s_w = jax.random.uniform(k3, (1, H), jnp.float32, -bound, bound)
    s_b = jax.random.uniform(k4, (1,), jnp.float32, -bound, bound)
    t_w = jax.random.uniform(k5, (1, H), jnp.float32, -bound, bound)
    t_b = jax.random.uniform(k6, (1,), jnp.float32, -bound, bound)

    hybrid, cos_loss, huber_loss, lam = sequence_level_hybrid_loss(
        student_output, teacher_output, student_mask, teacher_mask,
        s_w, s_b, t_w, t_b)
    jax.block_until_ready((hybrid, cos_loss, huber_loss))

    ref_hybrid, ref_cos, ref_huber = _reference(
        student_output, teacher_output, student_mask, teacher_mask,
        s_w, s_b, t_w, t_b, LAMBDA_WEIGHT)

    np.testing.assert_allclose(np.asarray(huber_loss), np.asarray(ref_huber),
                               rtol=5e-2, atol=5e-2)
    np.testing.assert_allclose(np.asarray(cos_loss), np.asarray(ref_cos),
                               rtol=5e-2, atol=5e-2)
    np.testing.assert_allclose(np.asarray(hybrid), np.asarray(ref_hybrid),
                               rtol=5e-2, atol=5e-2)
    print("KERNEL_OK")
</pallas_src>

<mosaic_0001>
module attributes {stable_mosaic.version = 11 : i64} {
  func.func @_hybrid_loss_kernel(%arg0: i32, %arg1: i32, %arg2: memref<1x16x32xf32, #tpu.memory_space<vmem>>, %arg3: memref<1x16x32xf32, #tpu.memory_space<vmem>>, %arg4: memref<2x16xf32, #tpu.memory_space<vmem>>, %arg5: memref<2x16xf32, #tpu.memory_space<vmem>>, %arg6: memref<1x32xbf16, #tpu.memory_space<vmem>>, %arg7: memref<1x32xbf16, #tpu.memory_space<vmem>>, %arg8: memref<1x1xf32, #tpu.memory_space<smem>>, %arg9: memref<1x1xf32, #tpu.memory_space<smem>>, %arg10: memref<1x8x128xf32, #tpu.memory_space<vmem>>, %arg11: memref<1x1xf32, #tpu.memory_space<vmem>>, %arg12: memref<1x1xf32, #tpu.memory_space<vmem>>, %arg13: memref<1x32xf32, #tpu.memory_space<vmem>>, %arg14: memref<1x1xf32, #tpu.memory_space<vmem>>, %arg15: memref<1x1xf32, #tpu.memory_space<vmem>>, %arg16: memref<1x32xf32, #tpu.memory_space<vmem>>) attributes {dimension_semantics = [#tpu.dimension_semantics<parallel>, #tpu.dimension_semantics<arbitrary>], iteration_bounds = array<i64: 2, 1>, scalar_prefetch = 0 : i64, scratch_operands = 6 : i64, tpu.core_type = #tpu.core_type<tc>, window_params = [{transform_indices = @transform_0, window_bounds = array<i64: 1, 16, 32>}, {transform_indices = @transform_1, window_bounds = array<i64: 1, 16, 32>}, {transform_indices = @transform_2, window_bounds = array<i64: 2, 16>}, {transform_indices = @transform_3, window_bounds = array<i64: 2, 16>}, {pipeline_mode = #tpu.pipeline_mode<synchronous>, transform_indices = @transform_4, window_bounds = array<i64: 1, 32>}, {pipeline_mode = #tpu.pipeline_mode<synchronous>, transform_indices = @transform_5, window_bounds = array<i64: 1, 32>}, {transform_indices = @transform_6, window_bounds = array<i64: 1, 1>}, {transform_indices = @transform_7, window_bounds = array<i64: 1, 1>}, {transform_indices = @transform_8, window_bounds = array<i64: 1, 8, 128>}]} {
    %c0_i32 = arith.constant 0 : i32
    %0 = arith.cmpi eq, %arg1, %c0_i32 : i32
    %1 = arith.extui %0 : i1 to i32
    %c0_i32_0 = arith.constant 0 : i32
    %2 = arith.cmpi ne, %1, %c0_i32_0 : i32
    scf.if %2 {
      %cst_53 = arith.constant 0xFF800000 : f32
      %80 = vector.broadcast %cst_53 : f32 to vector<1x1xf32>
      %c0_54 = arith.constant 0 : index
      %c0_55 = arith.constant 0 : index
      %81 = vector.load %arg11[%c0_54, %c0_55] : memref<1x1xf32, #tpu.memory_space<vmem>>, vector<1x1xf32>
      tpu.vector_store %arg11[%c0_54, %c0_55], %80 {strides = array<i32>} : memref<1x1xf32, #tpu.memory_space<vmem>>, vector<1x1xf32>,
      %c0_56 = arith.constant 0 : index
      %c0_57 = arith.constant 0 : index
      %82 = vector.load %arg14[%c0_56, %c0_57] : memref<1x1xf32, #tpu.memory_space<vmem>>, vector<1x1xf32>
      tpu.vector_store %arg14[%c0_56, %c0_57], %80 {strides = array<i32>} : memref<1x1xf32, #tpu.memory_space<vmem>>, vector<1x1xf32>,
      %cst_58 = arith.constant 0.000000e+00 : f32
      %83 = vector.broadcast %cst_58 : f32 to vector<1x1xf32>
      %c0_59 = arith.constant 0 : index
      %c0_60 = arith.constant 0 : index
      %84 = vector.load %arg12[%c0_59, %c0_60] : memref<1x1xf32, #tpu.memory_space<vmem>>, vector<1x1xf32>
      tpu.vector_store %arg12[%c0_59, %c0_60], %83 {strides = array<i32>} : memref<1x1xf32, #tpu.memory_space<vmem>>, vector<1x1xf32>,
      %cst_61 = arith.constant 0.000000e+00 : f32
      %85 = vector.broadcast %cst_61 : f32 to vector<1x1xf32>
      %c0_62 = arith.constant 0 : index
      %c0_63 = arith.constant 0 : index
      %86 = vector.load %arg15[%c0_62, %c0_63] : memref<1x1xf32, #tpu.memory_space<vmem>>, vector<1x1xf32>
      tpu.vector_store %arg15[%c0_62, %c0_63], %85 {strides = array<i32>} : memref<1x1xf32, #tpu.memory_space<vmem>>, vector<1x1xf32>,
      %cst_64 = arith.constant 0.000000e+00 : f32
      %87 = vector.broadcast %cst_64 : f32 to vector<1x32xf32>
      %c0_65 = arith.constant 0 : index
      %c0_66 = arith.constant 0 : index
      %88 = vector.load %arg13[%c0_65, %c0_66] : memref<1x32xf32, #tpu.memory_space<vmem>>, vector<1x32xf32>
      tpu.vector_store %arg13[%c0_65, %c0_66], %87 {strides = array<i32>} : memref<1x32xf32, #tpu.memory_space<vmem>>, vector<1x32xf32>,
      %cst_67 = arith.constant 0.000000e+00 : f32
      %89 = vector.broadcast %cst_67 : f32 to vector<1x32xf32>
      %c0_68 = arith.constant 0 : index
      %c0_69 = arith.constant 0 : index
      %90 = vector.load %arg16[%c0_68, %c0_69] : memref<1x32xf32, #tpu.memory_space<vmem>>, vector<1x32xf32>
      tpu.vector_store %arg16[%c0_68, %c0_69], %89 {strides = array<i32>} : memref<1x32xf32, #tpu.memory_space<vmem>>, vector<1x32xf32>,
    } else {
    }
    %c0 = arith.constant 0 : index
    %c0_1 = arith.constant 0 : index
    %c0_2 = arith.constant 0 : index
    %3 = vector.load %arg2[%c0, %c0_1, %c0_2] : memref<1x16x32xf32, #tpu.memory_space<vmem>>, vector<1x16x32xf32>
    %4 = vector.shape_cast %3 : vector<1x16x32xf32> to vector<16x32xf32>
    %5 = arith.truncf %4 : vector<16x32xf32> to vector<16x32xbf16>
    %c0_3 = arith.constant 0 : index
    %c0_4 = arith.constant 0 : index
    %6 = vector.load %arg6[%c0_3, %c0_4] : memref<1x32xbf16, #tpu.memory_space<vmem>>, vector<1x32xbf16>
    %cst = arith.constant dense<0.000000e+00> : vector<1x16xf32>
    %7 = tpu.matmul %6, %5, %cst {dimension_numbers = #tpu.dot_dimension_numbers<[1], [1], [0], [0], [0, 0, 1, 0], [], []>} : vector<1x32xbf16>, vector<16x32xbf16>, vector<1x16xf32> -> vector<1x16xf32>
    %c0_5 = arith.constant 0 : index
    %c0_6 = arith.constant 0 : index
    %8 = memref.load %arg8[%c0_5, %c0_6] : memref<1x1xf32, #tpu.memory_space<smem>>
    %9 = vector.broadcast %8 : f32 to vector<1x16xf32>
    %10 = arith.addf %7, %9 : vector<1x16xf32>
    %11 = arith.index_cast %arg0 : i32 to index
    %c0_7 = arith.constant 0 : index
    %12 = vector.load %arg4[%11, %c0_7] : memref<2x16xf32, #tpu.memory_space<vmem>>, vector<1x16xf32>
    %cst_8 = arith.constant 0.000000e+00 : f32
    %13 = vector.broadcast %cst_8 : f32 to vector<1x16xf32>
    %14 = arith.cmpf ogt, %12, %13 : vector<1x16xf32>
    %cst_9 = arith.constant -1.000000e+09 : f32
    %15 = vector.broadcast %cst_9 : f32 to vector<1x16xf32>
    %16 = arith.select %14, %10, %15 : vector<1x16xi1>, vector<1x16xf32>
    %c0_10 = arith.constant 0 : index
    %c0_11 = arith.constant 0 : index
    %17 = vector.load %arg11[%c0_10, %c0_11] : memref<1x1xf32, #tpu.memory_space<vmem>>, vector<1x1xf32>
    %cst_12 = arith.constant dense<0xFF800000> : vector<1xf32>
    %18 = vector.multi_reduction <maximumf>, %16, %cst_12 [1] : vector<1x16xf32> to vector<1xf32>
    %19 = vector.shape_cast %18 : vector<1xf32> to vector<1x1xf32>
    %20 = arith.maximumf %17, %19 : vector<1x1xf32>
    %21 = arith.subf %17, %20 : vector<1x1xf32>
    %22 = math.exp %21 : vector<1x1xf32>
    %23 = vector.broadcast %20 : vector<1x1xf32> to vector<1x16xf32>
    %24 = arith.subf %16, %23 : vector<1x16xf32>
    %25 = math.exp %24 : vector<1x16xf32>
    %c0_13 = arith.constant 0 : index
    %c0_14 = arith.constant 0 : index
    %26 = vector.load %arg12[%c0_13, %c0_14] : memref<1x1xf32, #tpu.memory_space<vmem>>, vector<1x1xf32>
    %27 = arith.mulf %22, %26 : vector<1x1xf32>
    %cst_15 = arith.constant dense<0.000000e+00> : vector<1xf32>
    %28 = vector.multi_reduction <add>, %25, %cst_15 [1] : vector<1x16xf32> to vector<1xf32>
    %29 = vector.shape_cast %28 : vector<1xf32> to vector<1x1xf32>
    %30 = arith.addf %27, %29 : vector<1x1xf32>
    %c0_16 = arith.constant 0 : index
    %c0_17 = arith.constant 0 : index
    %31 = vector.load %arg12[%c0_16, %c0_17] : memref<1x1xf32, #tpu.memory_space<vmem>>, vector<1x1xf32>
    tpu.vector_store %arg12[%c0_16, %c0_17], %30 {strides = array<i32>} : memref<1x1xf32, #tpu.memory_space<vmem>>, vector<1x1xf32>,
    %c0_18 = arith.constant 0 : index
    %c0_19 = arith.constant 0 : index
    %32 = vector.load %arg13[%c0_18, %c0_19] : memref<1x32xf32, #tpu.memory_space<vmem>>, vector<1x32xf32>
    %33 = vector.broadcast %22 : vector<1x1xf32> to vector<1x32xf32>
    %34 = arith.mulf %33, %32 : vector<1x32xf32>
    %35 = arith.truncf %25 : vector<1x16xf32> to vector<1x16xbf16>
    %cst_20 = arith.constant dense<0.000000e+00> : vector<1x32xf32>
    %36 = tpu.matmul %35, %5, %cst_20 {dimension_numbers = #tpu.dot_dimension_numbers<[1], [0], [0], [1], [0, 0, 1, 1], [], []>} : vector<1x16xbf16>, vector<16x32xbf16>, vector<1x32xf32> -> vector<1x32xf32>
    %37 = arith.addf %34, %36 : vector<1x32xf32>
    %c0_21 = arith.constant 0 : index
    %c0_22 = arith.constant 0 : index
    %38 = vector.load %arg13[%c0_21, %c0_22] : memref<1x32xf32, #tpu.memory_space<vmem>>, vector<1x32xf32>
    tpu.vector_store %arg13[%c0_21, %c0_22], %37 {strides = array<i32>} : memref<1x32xf32, #tpu.memory_space<vmem>>, vector<1x32xf32>,
    %c0_23 = arith.constant 0 : index
    %c0_24 = arith.constant 0 : index
    %39 = vector.load %arg11[%c0_23, %c0_24] : memref<1x1xf32, #tpu.memory_space<vmem>>, vector<1x1xf32>
    tpu.vector_store %arg11[%c0_23, %c0_24], %20 {strides = array<i32>} : memref<1x1xf32, #tpu.memory_space<vmem>>, vector<1x1xf32>,
    %c0_25 = arith.constant 0 : index
    %c0_26 = arith.constant 0 : index
    %c0_27 = arith.constant 0 : index
    %40 = vector.load %arg3[%c0_25, %c0_26, %c0_27] : memref<1x16x32xf32, #tpu.memory_space<vmem>>, vector<1x16x32xf32>
    %41 = vector.shape_cast %40 : vector<1x16x32xf32> to vector<16x32xf32>
    %42 = arith.truncf %41 : vector<16x32xf32> to vector<16x32xbf16>
    %c0_28 = arith.constant 0 : index
    %c0_29 = arith.constant 0 : index
    %43 = vector.load %arg7[%c0_28, %c0_29] : memref<1x32xbf16, #tpu.memory_space<vmem>>, vector<1x32xbf16>
    %cst_30 = arith.constant dense<0.000000e+00> : vector<1x16xf32>
    %44 = tpu.matmul %43, %42, %cst_30 {dimension_numbers = #tpu.dot_dimension_numbers<[1], [1], [0], [0], [0, 0, 1, 0], [], []>} : vector<1x32xbf16>, vector<16x32xbf16>, vector<1x16xf32> -> vector<1x16xf32>
    %c0_31 = arith.constant 0 : index
    %c0_32 = arith.constant 0 : index
    %45 = memref.load %arg9[%c0_31, %c0_32] : memref<1x1xf32, #tpu.memory_space<smem>>
    %46 = vector.broadcast %45 : f32 to vector<1x16xf32>
    %47 = arith.addf %44, %46 : vector<1x16xf32>
    %48 = arith.index_cast %arg0 : i32 to index
    %c0_33 = arith.constant 0 : index
    %49 = vector.load %arg5[%48, %c0_33] : memref<2x16xf32, #tpu.memory_space<vmem>>, vector<1x16xf32>
    %cst_34 = arith.constant 0.000000e+00 : f32
    %50 = vector.broadcast %cst_34 : f32 to vector<1x16xf32>
    %51 = arith.cmpf ogt, %49, %50 : vector<1x16xf32>
    %cst_35 = arith.constant -1.000000e+09 : f32
    %52 = vector.broadcast %cst_35 : f32 to vector<1x16xf32>
    %53 = arith.select %51, %47, %52 : vector<1x16xi1>, vector<1x16xf32>
    %c0_36 = arith.constant 0 : index
    %c0_37 = arith.constant 0 : index
    %54 = vector.load %arg14[%c0_36, %c0_37] : memref<1x1xf32, #tpu.memory_space<vmem>>, vector<1x1xf32>
    %cst_38 = arith.constant dense<0xFF800000> : vector<1xf32>
    %55 = vector.multi_reduction <maximumf>, %53, %cst_38 [1] : vector<1x16xf32> to vector<1xf32>
    %56 = vector.shape_cast %55 : vector<1xf32> to vector<1x1xf32>
    %57 = arith.maximumf %54, %56 : vector<1x1xf32>
    %58 = arith.subf %54, %57 : vector<1x1xf32>
    %59 = math.exp %58 : vector<1x1xf32>
    %60 = vector.broadcast %57 : vector<1x1xf32> to vector<1x16xf32>
    %61 = arith.subf %53, %60 : vector<1x16xf32>
    %62 = math.exp %61 : vector<1x16xf32>
    %c0_39 = arith.constant 0 : index
    %c0_40 = arith.constant 0 : index
    %63 = vector.load %arg15[%c0_39, %c0_40] : memref<1x1xf32, #tpu.memory_space<vmem>>, vector<1x1xf32>
    %64 = arith.mulf %59, %63 : vector<1x1xf32>
    %cst_41 = arith.constant dense<0.000000e+00> : vector<1xf32>
    %65 = vector.multi_reduction <add>, %62, %cst_41 [1] : vector<1x16xf32> to vector<1xf32>
    %66 = vector.shape_cast %65 : vector<1xf32> to vector<1x1xf32>
    %67 = arith.addf %64, %66 : vector<1x1xf32>
    %c0_42 = arith.constant 0 : index
    %c0_43 = arith.constant 0 : index
    %68 = vector.load %arg15[%c0_42, %c0_43] : memref<1x1xf32, #tpu.memory_space<vmem>>, vector<1x1xf32>
    tpu.vector_store %arg15[%c0_42, %c0_43], %67 {strides = array<i32>} : memref<1x1xf32, #tpu.memory_space<vmem>>, vector<1x1xf32>,
    %c0_44 = arith.constant 0 : index
    %c0_45 = arith.constant 0 : index
    %69 = vector.load %arg16[%c0_44, %c0_45] : memref<1x32xf32, #tpu.memory_space<vmem>>, vector<1x32xf32>
    %70 = vector.broadcast %59 : vector<1x1xf32> to vector<1x32xf32>
    %71 = arith.mulf %70, %69 : vector<1x32xf32>
    %72 = arith.truncf %62 : vector<1x16xf32> to vector<1x16xbf16>
    %cst_46 = arith.constant dense<0.000000e+00> : vector<1x32xf32>
    %73 = tpu.matmul %72, %42, %cst_46 {dimension_numbers = #tpu.dot_dimension_numbers<[1], [0], [0], [1], [0, 0, 1, 1], [], []>} : vector<1x16xbf16>, vector<16x32xbf16>, vector<1x32xf32> -> vector<1x32xf32>
    %74 = arith.addf %71, %73 : vector<1x32xf32>
    %c0_47 = arith.constant 0 : index
    %c0_48 = arith.constant 0 : index
    %75 = vector.load %arg16[%c0_47, %c0_48] : memref<1x32xf32, #tpu.memory_space<vmem>>, vector<1x32xf32>
    tpu.vector_store %arg16[%c0_47, %c0_48], %74 {strides = array<i32>} : memref<1x32xf32, #tpu.memory_space<vmem>>, vector<1x32xf32>,
    %c0_49 = arith.constant 0 : index
    %c0_50 = arith.constant 0 : index
    %76 = vector.load %arg14[%c0_49, %c0_50] : memref<1x1xf32, #tpu.memory_space<vmem>>, vector<1x1xf32>
    tpu.vector_store %arg14[%c0_49, %c0_50], %57 {strides = array<i32>} : memref<1x1xf32, #tpu.memory_space<vmem>>, vector<1x1xf32>,
    %c0_i32_51 = arith.constant 0 : i32
    %77 = arith.cmpi eq, %arg1, %c0_i32_51 : i32
    %78 = arith.extui %77 : i1 to i32
    %c0_i32_52 = arith.constant 0 : i32
    %79 = arith.cmpi ne, %78, %c0_i32_52 : i32
    scf.if %79 {
      %c0_53 = arith.constant 0 : index
      %c0_54 = arith.constant 0 : index
      %80 = vector.load %arg13[%c0_53, %c0_54] : memref<1x32xf32, #tpu.memory_space<vmem>>, vector<1x32xf32>
      %c0_55 = arith.constant 0 : index
      %c0_56 = arith.constant 0 : index
      %81 = vector.load %arg12[%c0_55, %c0_56] : memref<1x1xf32, #tpu.memory_space<vmem>>, vector<1x1xf32>
      %82 = vector.broadcast %81 : vector<1x1xf32> to vector<1x32xf32>
      %83 = arith.divf %80, %82 : vector<1x32xf32>
      %c0_57 = arith.constant 0 : index
      %c0_58 = arith.constant 0 : index
      %84 = vector.load %arg16[%c0_57, %c0_58] : memref<1x32xf32, #tpu.memory_space<vmem>>, vector<1x32xf32>
      %c0_59 = arith.constant 0 : index
      %c0_60 = arith.constant 0 : index
      %85 = vector.load %arg15[%c0_59, %c0_60] : memref<1x1xf32, #tpu.memory_space<vmem>>, vector<1x1xf32>
      %86 = vector.broadcast %85 : vector<1x1xf32> to vector<1x32xf32>
      %87 = arith.divf %84, %86 : vector<1x32xf32>
      %88 = arith.subf %83, %87 : vector<1x32xf32>
      %89 = math.absf %88 : vector<1x32xf32>
      %cst_61 = arith.constant 1.000000e+00 : f32
      %90 = vector.broadcast %cst_61 : f32 to vector<1x32xf32>
      %91 = arith.cmpf olt, %89, %90 : vector<1x32xf32>
      %cst_62 = arith.constant 5.000000e-01 : f32
      %92 = vector.broadcast %cst_62 : f32 to vector<1x32xf32>
      %93 = arith.mulf %92, %88 : vector<1x32xf32>
      %94 = arith.mulf %93, %88 : vector<1x32xf32>
      %cst_63 = arith.constant 5.000000e-01 : f32
      %95 = vector.broadcast %cst_63 : f32 to vector<1x32xf32>
      %96 = arith.subf %89, %95 : vector<1x32xf32>
      %cst_64 = arith.constant 1.000000e+00 : f32
      %97 = vector.broadcast %cst_64 : f32 to vector<1x32xf32>
      %98 = arith.mulf %97, %96 : vector<1x32xf32>
      %99 = arith.select %91, %94, %98 : vector<1x32xi1>, vector<1x32xf32>
      %cst_65 = arith.constant dense<0.000000e+00> : vector<1xf32>
      %100 = vector.multi_reduction <add>, %99, %cst_65 [1] : vector<1x32xf32> to vector<1xf32>
      %101 = vector.shape_cast %100 : vector<1xf32> to vector<1x1xf32>
      %102 = arith.mulf %83, %87 : vector<1x32xf32>
      %cst_66 = arith.constant dense<0.000000e+00> : vector<1xf32>
      %103 = vector.multi_reduction <add>, %102, %cst_66 [1] : vector<1x32xf32> to vector<1xf32>
      %104 = vector.shape_cast %103 : vector<1xf32> to vector<1x1xf32>
      %105 = arith.mulf %83, %83 : vector<1x32xf32>
      %cst_67 = arith.constant dense<0.000000e+00> : vector<1xf32>
      %106 = vector.multi_reduction <add>, %105, %cst_67 [1] : vector<1x32xf32> to vector<1xf32>
      %107 = vector.shape_cast %106 : vector<1xf32> to vector<1x1xf32>
      %108 = math.sqrt %107 : vector<1x1xf32>
      %109 = arith.mulf %87, %87 : vector<1x32xf32>
      %cst_68 = arith.constant dense<0.000000e+00> : vector<1xf32>
      %110 = vector.multi_reduction <add>, %109, %cst_68 [1] : vector<1x32xf32> to vector<1xf32>
      %111 = vector.shape_cast %110 : vector<1xf32> to vector<1x1xf32>
      %112 = math.sqrt %111 : vector<1x1xf32>
      %113 = arith.mulf %108, %112 : vector<1x1xf32>
      %cst_69 = arith.constant 9.99999993E-9 : f32
      %114 = vector.broadcast %cst_69 : f32 to vector<1x1xf32>
      %115 = arith.maximumf %113, %114 : vector<1x1xf32>
      %116 = arith.divf %104, %115 : vector<1x1xf32>
      %cst_70 = arith.constant 1.000000e+00 : f32
      %117 = vector.broadcast %cst_70 : f32 to vector<1x1xf32>
      %118 = arith.subf %117, %116 : vector<1x1xf32>
      %119 = tpu.iota {dimensions = array<i32: 0>} : vector<8x128xi32>
      %120 = tpu.iota {dimensions = array<i32: 1>} : vector<8x128xi32>
      %c0_i32_71 = arith.constant 0 : i32
      %121 = vector.broadcast %c0_i32_71 : i32 to vector<8x128xi32>
      %122 = arith.cmpi eq, %119, %121 : vector<8x128xi32>
      %c0_i32_72 = arith.constant 0 : i32
      %123 = vector.broadcast %c0_i32_72 : i32 to vector<8x128xi32>
      %124 = arith.cmpi eq, %120, %123 : vector<8x128xi32>
      %125 = arith.andi %122, %124 : vector<8x128xi1>
      %c0_i32_73 = arith.constant 0 : i32
      %126 = vector.broadcast %c0_i32_73 : i32 to vector<8x128xi32>
      %127 = arith.cmpi eq, %119, %126 : vector<8x128xi32>
      %c1_i32 = arith.constant 1 : i32
      %128 = vector.broadcast %c1_i32 : i32 to vector<8x128xi32>
      %129 = arith.cmpi eq, %120, %128 : vector<8x128xi32>
      %130 = arith.andi %127, %129 : vector<8x128xi1>
      %cst_74 = arith.constant 0.000000e+00 : f32
      %131 = vector.shape_cast %118 : vector<1x1xf32> to vector<1x1xf32>
      %132 = vector.broadcast %131 : vector<1x1xf32> to vector<8x128xf32>
      %133 = vector.broadcast %cst_74 : f32 to vector<8x128xf32>
      %134 = arith.select %130, %132, %133 : vector<8x128xi1>, vector<8x128xf32>
      %135 = vector.shape_cast %101 : vector<1x1xf32> to vector<1x1xf32>
      %136 = vector.broadcast %135 : vector<1x1xf32> to vector<8x128xf32>
      %137 = arith.select %125, %136, %134 : vector<8x128xi1>, vector<8x128xf32>
      %c0_75 = arith.constant 0 : index
      %c0_76 = arith.constant 0 : index
      %c0_77 = arith.constant 0 : index
      %138 = vector.load %arg10[%c0_75, %c0_76, %c0_77] : memref<1x8x128xf32, #tpu.memory_space<vmem>>, vector<1x8x128xf32>
      %139 = vector.shape_cast %138 : vector<1x8x128xf32> to vector<8x128xf32>
      %140 = vector.shape_cast %137 : vector<8x128xf32> to vector<1x8x128xf32>
      tpu.vector_store %arg10[%c0_75, %c0_76, %c0_77], %140 {strides = array<i32>} : memref<1x8x128xf32, #tpu.memory_space<vmem>>, vector<1x8x128xf32>,
    } else {
    }
    return
  }
  func.func @transform_0(%arg0: i32, %arg1: i32) -> (i32, i32, i32) {
    %c0_i32 = arith.constant 0 : i32
    %c0_i32_0 = arith.constant 0 : i32
    return %arg0, %arg1, %c0_i32 : i32, i32, i32
  }
  func.func @transform_1(%arg0: i32, %arg1: i32) -> (i32, i32, i32) {
    %c0_i32 = arith.constant 0 : i32
    %c0_i32_0 = arith.constant 0 : i32
    return %arg0, %arg1, %c0_i32 : i32, i32, i32
  }
  func.func @transform_2(%arg0: i32, %arg1: i32) -> (i32, i32) {
    %c0_i32 = arith.constant 0 : i32
    %c0_i32_0 = arith.constant 0 : i32
    return %c0_i32, %arg1 : i32, i32
  }
  func.func @transform_3(%arg0: i32, %arg1: i32) -> (i32, i32) {
    %c0_i32 = arith.constant 0 : i32
    %c0_i32_0 = arith.constant 0 : i32
    return %c0_i32, %arg1 : i32, i32
  }
  func.func @transform_4(%arg0: i32, %arg1: i32) -> (i32, i32) {
    %c0_i32 = arith.constant 0 : i32
    %c0_i32_0 = arith.constant 0 : i32
    %c0_i32_1 = arith.constant 0 : i32
    return %c0_i32, %c0_i32_0 : i32, i32
  }
  func.func @transform_5(%arg0: i32, %arg1: i32) -> (i32, i32) {
    %c0_i32 = arith.constant 0 : i32
    %c0_i32_0 = arith.constant 0 : i32
    %c0_i32_1 = arith.constant 0 : i32
    return %c0_i32, %c0_i32_0 : i32, i32
  }
  func.func @transform_6(%arg0: i32, %arg1: i32) -> (i32, i32) {
    %c0_i32 = arith.constant 0 : i32
    %c0_i32_0 = arith.constant 0 : i32
    %c0_i32_1 = arith.constant 0 : i32
    return %c0_i32, %c0_i32_0 : i32, i32
  }
  func.func @transform_7(%arg0: i32, %arg1: i32) -> (i32, i32) {
    %c0_i32 = arith.constant 0 : i32
    %c0_i32_0 = arith.constant 0 : i32
    %c0_i32_1 = arith.constant 0 : i32
    return %c0_i32, %c0_i32_0 : i32, i32
  }
  func.func @transform_8(%arg0: i32, %arg1: i32) -> (i32, i32, i32) {
    %c0_i32 = arith.constant 0 : i32
    %c0_i32_0 = arith.constant 0 : i32
    %c0_i32_1 = arith.constant 0 : i32
    return %arg0, %c0_i32, %c0_i32_0 : i32, i32, i32
  }
}

</mosaic_0001>

<bundles_post_ra>
// kernel: sequence_level_hybrid_loss.1
= control target key start
LH: loop header
LB: loop body
LE: loop exit
PB: predicated region body
PF: predicated region fallthrough
CT: control target
= control target key end

     0   :  { %s1469_s0 = inlined_call_operand.hbm [shape: f32[2,16,32], index: 0, kind: input, shape index: {}]   ;;  %s1470_s1 = inlined_call_operand.hbm [shape: f32[2,16,32], index: 1, kind: input, shape index: {}]   ;;  %s1471_s2 = inlined_call_operand.vmem [shape: f32[2,16], index: 2, kind: input, shape index: {}]   ;;  %s1472_s3 = inlined_call_operand.vmem [shape: f32[2,16], index: 3, kind: input, shape index: {}]   ;;  %s1473_s4 = inlined_call_operand.vmem [shape: bf16[1,32], index: 4, kind: input, shape index: {}]   ;;  %s1474_s5 = inlined_call_operand.vmem [shape: bf16[1,32], index: 5, kind: input, shape index: {}]   ;;  %s1475_s6 = inlined_call_operand.<no memory space> [shape: f32[1,1], index: 6, kind: input, shape index: {}]   ;;  %s1476_s7 = inlined_call_operand.<no memory space> [shape: f32[1,1], index: 7, kind: input, shape index: {}]   ;;  %s1477_s8 = inlined_call_operand.vmem [shape: f32[2,8,128], index: 8, kind: output, shape index: {}]  }
   0x1   :  { %1478 = sst [smem:[#allocation16_spill]] %s1469_s0 }
   0x2   :  { %13 = sst [smem:[#allocation8]] %s1475_s6 }
   0x3   :  { %14 = sst [smem:[#allocation9]] %s1476_s7 }
   0x4   :  { %15 = vsyncpa [#allocation11], 0 }
   0x5   :  { %17 = vsyncpa [#allocation11 + $0x1], 0 }
   0x6   :  { %18 = vsyncpa [#allocation13], 0 }
   0x7   :  { %20 = vsyncpa [#allocation13 + $0x1], 0  ;;  %s1260_s9 = smov 0   ;;  %s1262_s10 = smov 0  }
   0x8   :  { %s1264_s11 = smov 0   ;;  %s1266_s12 = smov 0  }
   0x9   :  { %s1268_s13 = smov 0   ;;  %s1270_s14 = smov 0  }
   0xa LB: > { %s946_s6 = sadd.s32 4294967295, %s1199_s14   ;;  %s38_s7 = sadd.s32 1, %s1195_s13  ;;  %s1199_s14 = sphi %s1270_s14, %s26_s14   ;;  %s1195_s13 = sphi %s1268_s13, %s1488_s13   ;;  %s1191_s12 = sphi %s1266_s12, %s1487_s12   ;;  %s1187_s11 = sphi %s1264_s11, %s1486_s11   ;;  %s1183_s10 = sphi %s1262_s10, %s1485_s10   ;;  %s1179_s9 = sphi %s1260_s9, %s1484_s9  }
   0xb   : > { %p40_p0 = scmp.ge.s32.totalorder %s38_s7, 2  ;;  %s47_s15 = sadd.s32 1, %s1187_s11 }
   0xc   : > { %p54_p1 = scmp.ne.s32.totalorder %s1187_s11, %s1183_s10  ;;  %p55_p2 = scmp.eq.s32.totalorder %s1199_s14, 0 }
   0xd   : > { %s1490_s7 = smov (%p40_p0, %s38_s7), 0  ;;  %p60_p4 = scmp.ne.s32.totalorder %s1183_s10, %s1179_s9 }
   0xe   : > { %p1296_p3 = por %p55_p2, %p54_p1  ;;  %s42_s17 = ssub.s32 %s1195_s13, %s1490_s7 }
   0xf   : > { %p61_p5 = scmp.eq.s32.totalorder %s946_s6, 0  ;;  %p45_p6 = scmp.eq.s32.totalorder %s42_s17, 0 }
  0x10   : > { %p1014_p8 = scmp.lt.s32.totalorder %s1199_s14, 2  ;;  %s1312_s20 = sand.u32 1, %s1187_s11  }
  0x11   : > { %p1303_p7 = por %p61_p5, %p60_p4  ;;  %s969_s21 = sshll.u32 %s1195_s13, 8 }
  0x12   : > { %s1309_s19 = scalar_select %p45_p6, %s1187_s11, %s47_s15  }
  0x13   : > { %s952_s22 = sshll.u32 %s1312_s20, 4  ;;  %s1481_s0 = sld [smem:[#allocation16_spill]] }
  0x14   : > { %s304_s26 = scalar_lea.vmem [#allocation10], %s952_s22  ;;  %p1323_p9 = pnand %p1014_p8, %p1296_p3 }
  0x15   : > { %s313_s27 = sshll.u32 %s304_s26, 4  ;;  %s301_s29 = scalar_lea.sflag [#allocation11], %s1312_s20  ;;  %s314_s27 = int_to_ptr.vmem [resolvable:$true] %s313_s27 }
  0x16   : > { %p1091_p10 = pneg %p1323_p9  ;;  %s1102_s30 = scalar_lea.vmem %s314_s27, 256 }
  0x17   : > { %p1103_p11 = scmp.ne.s32.totalorder %s314_s27, %s1102_s30  ;;  %s1201_s9 = smov [#allocation10]  }
  0x18   : > { %s1107_s6 = sshll.u32 %s1201_s9, 4  ;;  %s1108_s6 = int_to_ptr.vmem [resolvable:$false] %s1107_s6 }
  0x19   : > { %s312_s25 = scalar_lea.hbm %s1481_s0, %s969_s21  ;;  %p1105_p12 = pnand %p1103_p11, %p1091_p10 }
  0x1a   : > { %s1109_s15 = scalar_lea.vmem %s1108_s6, 512  ;;  %p1110_p0 = scmp.lt.s32.totalorder %s314_s27, %s1108_s6 }
  0x1b   : > { %p1106_p13 = pneg %p1105_p12  ;;  %p1111_p1 = scmp.lt.s32.totalorder %s1109_s15, %s1102_s30 }
  0x1d   : > { %p1112_p2 = por %p1111_p1, %p1110_p0 }
  0x1f   : > { %p1113_p3 = pnand %p1112_p2, %p1106_p13 }
  0x21   : > { %1116 = shalt.err (!%p1113_p3)
}
  0x22   : > { %s1202_s16 = smov 128   ;;  %s1203_s17 = smov 8  }
  0x23   : > { %1010 = dma.hbm_to_vmem [thread:$0]  (!%p1323_p9), %s312_s25, 256, %s314_s27, %s301_s29, %s1202_s16, %s1202_s16, %s1203_s17  }
  0x24   : > { %p958_p4 = scmp.ge.s32.totalorder %s1199_s14, 1  ;;  %p344_p5 = scmp.lt.s32.totalorder %s1199_s14, 3 }
  0x25   : > { %s335_s30 = scalar_lea.hbm %s1470_s1, %s969_s21  ;;  %s327_s9 = scalar_lea.vmem [#allocation12], %s952_s22 }
  0x26   : > { %p1337_p6 = pnand %p958_p4, %p344_p5  ;;  %s336_s6 = sshll.u32 %s327_s9, 4  ;;  %s337_s6 = int_to_ptr.vmem [resolvable:$true] %s336_s6 }
  0x27   : > { %s324_s15 = scalar_lea.sflag [#allocation13], %s1312_s20  ;;  %s1130_s0 = scalar_lea.vmem %s337_s6, 256 }
  0x28   : > { %p1131_p8 = scmp.ne.s32.totalorder %s337_s6, %s1130_s0  ;;  %s1204_s25 = smov [#allocation12]  }
  0x29   : > { %s1135_s27 = sshll.u32 %s1204_s25, 4  ;;  %s1136_s27 = int_to_ptr.vmem [resolvable:$false] %s1135_s27 }
  0x2a   : > { %p1133_p11 = pnand %p1131_p8, %p1091_p10  ;;  %s1137_s29 = scalar_lea.vmem %s1136_s27, 512 }
  0x2b   : > { %p1138_p13 = scmp.lt.s32.totalorder %s337_s6, %s1136_s27  ;;  %p1139_p0 = scmp.lt.s32.totalorder %s1137_s29, %s1130_s0 }
  0x2c   : > { %p1134_p12 = pneg %p1133_p11 }
  0x2d   : > { %p1140_p1 = por %p1139_p0, %p1138_p13 }
  0x2f   : > { %p1141_p2 = pnand %p1140_p1, %p1134_p12 }
  0x31   : > { %1144 = shalt.err (!%p1141_p2)
}
  0x32   : > { %1013 = dma.hbm_to_vmem [thread:$0]  (!%p1323_p9), %s335_s30, 256, %s337_s6, %s324_s15, %s1202_s16, %s1202_s16, %s1203_s17  }
  0x33   : > { %348 = sbr.rel (%p1337_p6) target bundleno = 1521 (0x5f1), region = 52  ;;  %s350_s20 = sand.u32 (!%p1337_p6), 1, %s1183_s10  }
  0x34   : > { %s959_s21 = sshll.u32 (!%p1337_p6), %s350_s20, 4  ;;  %s351_s22 = scalar_lea.sflag (!%p1337_p6), [#allocation11], %s350_s20 }
  0x35   : > { %s354_s24 = scalar_lea.vmem (!%p1337_p6), [#allocation10], %s959_s21 }
  0x38   : > { %1170 = dma.done.wait (%p1303_p7), %s351_s22, 256  }
  0x39   : > { %1172 = vsyncadd (%p1303_p7), %s351_s22, 4294967040  ;;  %s360_s0 = scalar_lea.sflag [#allocation13], %s350_s20  ;;  %s1359_s26 = scalar_lea.vmem [#allocation12], %s959_s21 }
  0x3a   : > { %1174 = dma.done.wait (%p1303_p7), %s360_s0, 256  }
  0x3b   : > { %1176 = vsyncadd (%p1303_p7), %s360_s0, 4294967040  ;;  %v1205_v0 = vmov 0.0   ;;  %vm1206_vm0 = vmmov 0   ;;  %v435_v1 = vld [vmem:[%s354_s24] sm:$0xff]  ;;  %v436_v2 = vld [vmem:[%s354_s24 + $0x8] sm:$0xff]  ;;  %vm441_vm1 = vcmask 261120   ;;  %s488_s30 = scalar_lea.vmem %s1471_s2, %s1191_s12  ;;  %v506_v24 = vlaneseq  ;;  %s633_s29 = scalar_lea.vmem %s1472_s3, %s1191_s12 }
  0x3c   : > { %979 = vmatprep.subr.bf16.mxu0 %v1205_v0  ;;  %981 = vmatprep.mubr.msk.bf16.mxu0 %vm1206_vm0, %v1205_v0  ;;  %v437_v3 = vpack.c.bf16 %v436_v2, %v435_v1  ;;  %v438_v5 = vld [vmem:[%s1473_s4] sm:$0x1]  ;;  %vm427_vm2 = vcmask 0   ;;  %v1207_v6 = vmov -inf   ;;  %s439_s16 = sld [smem:[#allocation8]]  ;;  %vm493_vm4 = vcmask 122880  }
  0x3d   : > { %985 = vmatprep.subr.bf16.mxu1 %v1205_v0  ;;  %987 = vmatprep.mubr.msk.bf16.mxu1 %vm1206_vm0, %v1205_v0  ;;  %428 = vst.msk [vmem:[#allocation2] sm:$0x1] %vm427_vm2, %v1207_v6  ;;  %429 = vst.msk [vmem:[#allocation5] sm:$0x1] %vm427_vm2, %v1207_v6  ;;  %v489_v7 = vld [vmem:[%s488_s30] sm:$0x1] }
  0x3e   : > { %v446_v4 = vsel %vm441_vm1, %v437_v3, 0  ;;  %986 = vmatpush3.bf16.msra.mxu1 %v437_v3  ;;  %430 = vst.msk [vmem:[#allocation3] sm:$0x1] %vm427_vm2, %v1205_v0  ;;  %431 = vst.msk [vmem:[#allocation6] sm:$0x1] %vm427_vm2, %v1205_v0  ;;  %vm490_vm3 = vcmp.gt.f32.partialorder %v489_v7, 0.0 }
  0x3f   : > { %980 = vmatpush3.bf16.xpose.msra.mxu0 %v446_v4  ;;  %991 = vmatprep.subr.bf16.mxu1 %v1205_v0  ;;  %v1208_v16 = vmov 0   ;;  %v581_v21 = vld [vmem:[%s1359_s26] sm:$0xff]  ;;  %v582_v22 = vld [vmem:[%s1359_s26 + $0x8] sm:$0xff]  ;;  %v1399_v25 = vshrl.u32 %v506_v24, 7  ;;  %vm533_vm5 = vcmask 130048   ;;  %s585_s15 = sld [smem:[#allocation9]] }
  0x40   : > { %997 = vmatprep.subr.bf16.mxu0 %v1205_v0  ;;  %1069 = vset.pattern.permute.xlu0 %v1208_v16  ;;  %v583_v23 = vpack.c.bf16 %v582_v22, %v581_v21  ;;  %v584_v34 = vld [vmem:[%s1474_s5] sm:$0x1]  ;;  %vm432_vm7 = vcmask 253952   ;;  %p418_p7 = scmp.lt.s32.totalorder %s1191_s12, 1 }
  0x41   : > { %1070 = vset.pattern.permute.xlu1 %v1208_v16  ;;  %v1402_v26 = vsub.s32 0, %v1399_v25  ;;  %v634_v38 = vld [vmem:[%s633_s29] sm:$0x1]  ;;  %434 = vst.msk [vmem:[#allocation7] sm:$0x1] %vm432_vm7, %v1205_v0  ;;  %vm796_vm13 = vcmp.eq.s32.totalorder %v1399_v25, 0 }
  0x42   : > { %v440_v8 = vstv %s439_s16  ;;  %v591_v33 = vsel %vm441_vm1, %v583_v23, 0  ;;  %vm635_vm6 = vcmp.gt.f32.partialorder %v634_v38, 0.0  ;;  %433 = vst.msk [vmem:[#allocation4] sm:$0x1] %vm432_vm7, %v1205_v0  ;;  %s1492_s12 = smov (!%p418_p7, %s1191_s12), 1 }
  0x43   : > { %s961_s20 = sshll.u32 %s1492_s12, 3 }
  0x44   : > { %v1391_v17 = vld [vmem:[#allocation2] sm:$0x1]  ;;  %v637_v48 = vld [vmem:[#allocation5] sm:$0x1]  ;;  %s421_s24 = scalar_lea.vmem %s1477_s8, %s961_s20 }
  0x45   : > { %v586_v40 = vstv %s585_s15  ;;  %v513_v1 = vld [vmem:[#allocation3] sm:$0x1]  ;;  %v657_v6 = vld [vmem:[#allocation6] sm:$0x1] }
  0x46   : > { %982 = vmatmul.mubr.msk.bf16.vlgmr.msra.gmra.mxu0 %vm441_vm1, %v438_v5 }
  0x47   : > { %999 = vmatprep.mubr.msk.bf16.mxu0 %vm1206_vm0, %v1205_v0  ;;  %998 = vmatpush3.bf16.msra.mxu0 %v583_v23 }
  0x49   : > { %v521_v23 = vld [vmem:[#allocation4] sm:$0x1] }
 0x106   : > { %v482_v9 = vpop.f32.mrf.mxu0 }
 0x107   : > { %v483_v10 = vadd.f32 %v482_v9, %v440_v8 }
 0x108   : > { %v983_v11 = vpop.f32.mrf.mxu0 }
 0x109   : > { %v491_v12 = vsel %vm490_vm3, %v483_v10, -1e+09 }
 0x10a   : > { %v485_v13 = vpop.f32.mrf.mxu0  ;;  %v494_v14 = vsel %vm493_vm4, %v491_v12, -inf }
 0x10b   : > { %495 = vmax.xlane.f32.xlu0 %v494_v14 }
 0x10c   : > { %v984_v15 = vpop.f32.mrf.mxu0 }
 0x194   : > { %v496_v18 = vpop.xlane.xlu0 %495 }
 0x195   : > { %v497_v19 = vmax.f32 %v1391_v17, %v496_v18 }
 0x197   : > { %v498_v20 = vsub.f32 %v1391_v17, %v497_v19  ;;  %580 = vst.msk [vmem:[#allocation2] sm:$0x1] %vm427_vm2, %v497_v19  ;;  %503 = vperm.xlu0 %1069, %v497_v19  }
 0x199   : > { %v499_v61 = vmul.f32 1.442695, %v498_v20 }
 0x212   : > { %v504_v27 = vpop.permute.xlu0 %503 }
 0x213   : > { %v509_v28 = vrot.slane %v504_v27, %v1402_v26 }
 0x215   : > { %v510_v29 = vsub.f32 %v491_v12, %v509_v28  ;;  %v664_v12 = vld [vmem:[#allocation7] sm:$0x1] }
 0x217   : > { %v511_v30 = vmul.f32 1.442695, %v510_v29 }
 0x219   : > { %1071 = vpow2.f32 %v511_v30 }
 0x226   : > { %v1072_v31 = vpop.eup %1071 }
 0x227   : > { %v532_v32 = vpack.c.bf16 %v1072_v31, %v1072_v31  ;;  %v515_v52 = vsel %vm493_vm4, %v1072_v31, 0.0 }
 0x229   : > { %988 = vmatmul.mubr.msk.bf16.vlgmr.msra.gmra.mxu1 %vm533_vm5, %v532_v32 }
 0x22a   : > { %992 = vmatpush3.bf16.xpose.msra.mxu1 %v591_v33  ;;  %993 = vmatprep.mubr.msk.bf16.mxu1 %vm1206_vm0, %v1205_v0 }
 0x231   : > { %994 = vmatmul.mubr.msk.bf16.vlgmr.msra.gmra.mxu1 %vm441_vm1, %v584_v34 }
 0x2e9   : > { %v1413_v35 = vpop.f32.mrf.mxu1 }
 0x2eb   : > { %v989_v36 = vpop.f32.mrf.mxu1 }
 0x2ed   : > { %v574_v37 = vpop.f32.mrf.mxu1 }
 0x2ef   : > { %v990_v39 = vpop.f32.mrf.mxu1 }
 0x2f1   : > { %v627_v41 = vpop.f32.mrf.mxu1 }
 0x2f2   : > { %v628_v42 = vadd.f32 %v627_v41, %v586_v40 }
 0x2f3   : > { %v995_v43 = vpop.f32.mrf.mxu1 }
 0x2f4   : > { %v636_v44 = vsel %vm635_vm6, %v628_v42, -1e+09 }
 0x2f5   : > { %v630_v45 = vpop.f32.mrf.mxu1  ;;  %v638_v46 = vsel %vm493_vm4, %v636_v44, -inf }
 0x2f6   : > { %639 = vmax.xlane.f32.xlu1 %v638_v46 }
 0x2f7   : > { %v996_v47 = vpop.f32.mrf.mxu1 }
 0x37f   : > { %v640_v49 = vpop.xlane.xlu1 %639 }
 0x380   : > { %v641_v50 = vmax.f32 %v637_v48, %v640_v49 }
 0x382   : > { %v642_v51 = vsub.f32 %v637_v48, %v641_v50  ;;  %721 = vst.msk [vmem:[#allocation5] sm:$0x1] %vm427_vm2, %v641_v50  ;;  %647 = vperm.xlu1 %1070, %v641_v50  }
 0x384   : > { %v643_v60 = vmul.f32 1.442695, %v642_v51 }
 0x3a6   : > { %516 = vadd.xlane.f32.xlu1 %v515_v52 }
 0x3fd   : > { %v648_v53 = vpop.permute.xlu1 %647 }
 0x3fe   : > { %v653_v54 = vrot.slane %v648_v53, %v1402_v26 }
 0x400   : > { %v654_v55 = vsub.f32 %v636_v44, %v653_v54 }
 0x402   : > { %v655_v56 = vmul.f32 1.442695, %v654_v55 }
 0x404   : > { %1073 = vpow2.f32 %v655_v56 }
 0x405   : > { %1075 = vpow2.f32 %v643_v60 }
 0x406   : > { %1077 = vpow2.f32 %v499_v61 }
 0x411   : > { %v1074_v57 = vpop.eup %1073 }
 0x412   : > { %v659_v58 = vsel %vm493_vm4, %v1074_v57, 0.0  ;;  %v675_v59 = vpack.c.bf16 %v1074_v57, %v1074_v57  ;;  %v1076_v62 = vpop.eup %1075 }
 0x413   : > { %660 = vadd.xlane.f32.xlu0 %v659_v58  ;;  %v1078_v63 = vpop.eup %1077  ;;  %v658_v7 = vmul.f32 %v1076_v62, %v657_v6 }
 0x414   : > { %1000 = vmatmul.mubr.msk.bf16.vlgmr.msra.gmra.mxu0 %vm533_vm5, %v675_v59  ;;  %v514_v2 = vmul.f32 %v1078_v63, %v513_v1  ;;  %v795_v1 = vand.u32 127, %v506_v24 }
 0x416   : > { %vm799_vm14 = vcmp.eq.s32.totalorder %v795_v1, 1  ;;  %vm797_vm15 = vcmp.eq.s32.totalorder %v795_v1, 0 }
 0x417   : > { %vm800_vm0 = vmand %vm796_vm13, %vm799_vm14 }
 0x418   : > { %vm798_vm1 = vmand %vm796_vm13, %vm797_vm15 }
 0x429   : > { %667 = vperm.xlu0 %1069, %v1076_v62  }
 0x42f   : > { %v517_v3 = vpop.xlane.xlu1 %516 }
 0x430   : > { %v518_v4 = vadd.f32 %v517_v3, %v514_v2 }
 0x432   : > { %520 = vst.msk [vmem:[#allocation3] sm:$0x1] %vm427_vm2, %v518_v4 }
 0x439   : > { %v726_v5 = vld [vmem:[#allocation3] sm:$0x1] }
 0x43a   : > { %729 = vperm.xlu1 %1070, %v726_v5  }
 0x49c   : > { %v661_v8 = vpop.xlane.xlu0 %660 }
 0x49d   : > { %v662_v9 = vadd.f32 %v661_v8, %v658_v7 }
 0x49f   : > { %663 = vst.msk [vmem:[#allocation6] sm:$0x1] %vm427_vm2, %v662_v9 }
 0x4a4   : > { %v668_v0 = vpop.permute.xlu0 %667 }
 0x4a5   : > { %v673_v11 = vrot.slane %v668_v0, %v1402_v26 }
 0x4a6   : > { %v739_v10 = vld [vmem:[#allocation6] sm:$0x1] }
 0x4a7   : > { %742 = vperm.xlu1 %1070, %v739_v10   ;;  %v674_v13 = vmul.f32 %v673_v11, %v664_v12 }
 0x4ab   : > { %524 = vperm.xlu1 %1070, %v1078_v63  }
 0x4b5   : > { %v730_v19 = vpop.permute.xlu1 %729 }
 0x4b6   : > { %v735_v21 = vrot.slane %v730_v19, %v1402_v26 }
 0x4d4   : > { %v713_v14 = vpop.f32.mrf.mxu0 }
 0x4d5   : > { %v719_v15 = vadd.f32 %v713_v14, %v674_v13 }
 0x4d6   : > { %v1001_v16 = vpop.f32.mrf.mxu0 }
 0x4d7   : > { %720 = vst.msk [vmem:[#allocation7] sm:$0x1] %vm432_vm7, %v719_v15 }
 0x4d8   : > { %v716_v17 = vpop.f32.mrf.mxu0 }
 0x4da   : > { %v1002_v18 = vpop.f32.mrf.mxu0 }
 0x4de   : > { %v738_v32 = vld [vmem:[#allocation7] sm:$0x1] }
 0x522   : > { %v743_v20 = vpop.permute.xlu1 %742 }
 0x523   : > { %v748_v22 = vrot.slane %v743_v20, %v1402_v26 }
 0x525   : > { %1079 = vrcp.f32 %v748_v22 }
 0x526   : > { %v525_v27 = vpop.permute.xlu1 %524  ;;  %1081 = vrcp.f32 %v735_v21 }
 0x527   : > { %v530_v28 = vrot.slane %v525_v27, %v1402_v26 }
 0x529   : > { %v531_v29 = vmul.f32 %v530_v28, %v521_v23 }
 0x52b   : > { %v577_v30 = vadd.f32 %v1413_v35, %v531_v29 }
 0x52d   : > { %579 = vst.msk [vmem:[#allocation4] sm:$0x1] %vm432_vm7, %v577_v30 }
 0x532   : > { %v1080_v31 = vpop.eup %1079 }
 0x533   : > { %v750_v33 = vmul.f32 %v1080_v31, %v738_v32  ;;  %v1082_v34 = vpop.eup %1081 }
 0x534   : > { %v725_v36 = vld [vmem:[#allocation4] sm:$0x1] }
 0x535   : > { %v776_v37 = vmul.f32 %v750_v33, %v750_v33  ;;  %v737_v38 = vmul.f32 %v1082_v34, %v725_v36 }
 0x537   : > { %v777_v39 = vsel %vm432_vm7, %v776_v37, 0.0  ;;  %v765_v40 = vmul.f32 %v737_v38, %v737_v38  ;;  %v751_v41 = vsub.f32 %v737_v38, %v750_v33  ;;  %v761_v43 = vmul.f32 %v750_v33, %v737_v38 }
 0x538   : > { %778 = vadd.xlane.f32.xlu0 %v777_v39 }
 0x539   : > { %v766_v42 = vsel %vm432_vm7, %v765_v40, 0.0  ;;  %v752_v44 = vand.u32 2147483647, %v751_v41  ;;  %v754_v45 = vmul.f32 0.5, %v751_v41  ;;  %v762_v47 = vsel %vm432_vm7, %v761_v43, 0.0 }
 0x53a   : > { %767 = vadd.xlane.f32.xlu1 %v766_v42 }
 0x53b   : > { %vm753_vm8 = vcmp.lt.f32.partialorder %v752_v44, 1.0  ;;  %v755_v35 = vmul.f32 %v754_v45, %v751_v41  ;;  %v966_v46 = vadd.f32 -0.5, %v752_v44 }
 0x53d   : > { %v757_v48 = vsel %vm753_vm8, %v755_v35, %v966_v46 }
 0x53e   : > { %763 = vadd.xlane.f32.xlu1 %v762_v47  ;;  %v758_v49 = vsel %vm432_vm7, %v757_v48, 0.0 }
 0x542   : > { %759 = vadd.xlane.f32.xlu1 %v758_v49 }
 0x5c1   : > { %v779_v50 = vpop.xlane.xlu0 %778 }
 0x5c2   : > { %1083 = vrsqrt.f32 %v779_v50  ;;  %vm782_vm9 = vcmp.eq.f32.partialorder %v779_v50, inf  ;;  %v785_v57 = vand.u32 2147483648, %v779_v50  ;;  %vm784_vm11 = vcmp.eq.f32.partialorder %v779_v50, 0.0 }
 0x5c3   : > { %v768_v51 = vpop.xlane.xlu1 %767 }
 0x5c4   : > { %1085 = vrsqrt.f32 %v768_v51  ;;  %vm771_vm10 = vcmp.eq.f32.partialorder %v768_v51, inf  ;;  %v774_v58 = vand.u32 2147483648, %v768_v51  ;;  %vm773_vm12 = vcmp.eq.f32.partialorder %v768_v51, 0.0 }
 0x5c7   : > { %v764_v2 = vpop.xlane.xlu1 %763 }
 0x5cb   : > { %v760_v6 = vpop.xlane.xlu1 %759 }
 0x5cc   : > { %v809_v24 = vrot.slane %v760_v6, %v1402_v26 }
 0x5cf   : > { %v1084_v52 = vpop.eup %1083 }
 0x5d0   : > { %v781_v53 = vmul.f32 %v1084_v52, %v779_v50 }
 0x5d1   : > { %v1086_v54 = vpop.eup %1085 }
 0x5d2   : > { %v783_v55 = vsel %vm782_vm9, %v779_v50, %v781_v53  ;;  %v770_v56 = vmul.f32 %v1086_v54, %v768_v51 }
 0x5d3   : > { %v786_v60 = vsel %vm784_vm11, %v785_v57, %v783_v55 }
 0x5d4   : > { %v772_v59 = vsel %vm771_vm10, %v768_v51, %v770_v56 }
 0x5d5   : > { %v775_v61 = vsel %vm773_vm12, %v774_v58, %v772_v59 }
 0x5d6   : > { %v787_v62 = vmul.f32 %v786_v60, %v775_v61 }
 0x5d8   : > { %v788_v63 = vmax.f32 %v787_v62, 1e-08 }
 0x5da   : > { %1087 = vrcp.f32 %v788_v63 }
 0x5e7   : > { %v1088_v3 = vpop.eup %1087 }
 0x5e8   : > { %v790_v4 = vmul.f32 %v1088_v3, %v764_v2 }
 0x5ea   : > { %v791_v5 = vsub.f32 1.0, %v790_v4 }
 0x5ec   : > { %v804_v7 = vrot.slane %v791_v5, %v1402_v26 }
 0x5ee   : > { %v805_v8 = vsel %vm800_vm0, %v804_v7, 0.0 }
 0x5ef   : > { %v810_v9 = vsel %vm798_vm1, %v809_v24, %v805_v8 }
 0x5f0   : > { %811 = vst [vmem:[%s421_s24] sm:$0xff] %v810_v9 }
 0x5f1 PF: > { %s26_s14 = sadd.s32 1, %s1199_s14   ;;  %s1484_s9 = smov %s1183_s10 }
 0x5f2   : > { %p23_p9 = scmp.ge.s32.totalorder %s26_s14, 4   ;;  %s1485_s10 = smov %s1187_s11 }
 0x5f3   : > { %s1486_s11 = smov %s1309_s19  ;;  %s1487_s12 = smov %s1195_s13 }
 0x5f4   : > { %s1488_s13 = smov %s1490_s7  ;;  %25 = sbr.rel (!%p23_p9) target bundleno = 10 (0xa), region = 121 }
 0x5f9   :  { %831 = vsyncpa [#allocation11], 1 }
 0x5fa   :  { %833 = vsyncpa [#allocation11 + $0x1], 1 }
 0x5fb   :  { %834 = vsyncpa [#allocation13], 1 }
 0x5fc   :  { %836 = vsyncpa [#allocation13 + $0x1], 1 }

</bundles_post_ra>
